<compile_context>
chip_gen: v7x
topology: tpu7x:2x2x1
jax: 0.10.0
libtpu: 0.0.40
codegen_flags: <defaults>
</compile_context>

<pallas_src>
import jax
import jax.numpy as jnp
from jax.experimental import pallas as pl
from jax.experimental.pallas import tpu as pltpu


# Static problem configuration (implied by the PyTorch module / its inputs).
BX, BY, S, D, H, O = 4, 5, 50, 10, 32, 16
assert BX >= 1 and BY >= 1, "kernel assumes non-empty batches for both branches"
S_PAD = 56               # S rounded up to a multiple of 8 (sublane alignment)
O_PAD = 128              # lane-dense output (unmasked full-lane stores)
B_TOTAL = BX + BY


def simple_kernel(lhs_ref, params_ref, out_ref):
    # lhs_ref:    (B_TOTAL * S_PAD, D)  stacked + S-padded x and y
    # params_ref: (D + 1, O_PAD)        rows [0, D) = W_fused, row D = 2*b_fused
    # out_ref:    (S_PAD, O_PAD)
    wf = params_ref[:D, :]             # (D, O_PAD) fused weight (lane-padded)
    bf2 = params_ref[D:D + 1, :]       # (1, O_PAD) bias with the 2x pre-folded

    # ONE MXU matmul for all B_TOTAL batch elements of both branches.
    prod = jnp.dot(lhs_ref[...], wf, preferred_element_type=jnp.float32)

    # Batch-max folds over sublane-aligned (S_PAD % 8 == 0) static slices.
    def blk(b):
        return prod[b * S_PAD:(b + 1) * S_PAD, :]

    m1 = blk(0)
    for b in range(1, BX):
        m1 = jnp.maximum(m1, blk(b))
    m2 = blk(BX)
    for b in range(BX + 1, B_TOTAL):
        m2 = jnp.maximum(m2, blk(b))

    # Bias is batch-constant so it commutes with the batch max; the factor 2
    # (one bias add per branch) already lives in bf2.
    out_ref[...] = (m1 + m2 + bf2).astype(out_ref.dtype)


def prepare_packed_params(w1, b1, w2, b2):
    """One-time parameter prep (hoisted out of the per-call path).

    Fuses lin2(lin1(x)) == x @ W_fused + b_fused (exact: no nonlinearity in
    between) and packs everything into a single lane-dense (D+1, O_PAD) array:
      rows [0, D): W_fused = W1^T @ W2^T, zero-padded to 128 lanes
      row  D:      2 * (b1 @ W2^T + b2)   (both branches share lin2's bias)
    """
    w_fused = w1.T @ w2.T                      # (D, O)
    b_fused2 = 2.0 * (b1 @ w2.T + b2)          # (O,)
    packed = jnp.zeros((D + 1, O_PAD), jnp.float32)
    packed = packed.at[:D, :O].set(w_fused)
    packed = packed.at[D, :O].set(b_fused2)
    return packed


@jax.jit
def simple_forward(x, y, packed_params):
    """x: (BX, S, D), y: (BY, S, D), packed_params from prepare_packed_params."""
    # Pad S -> S_PAD with zeros (harmless: max is over batch, padded rows are
    # sliced off below), stack both branches, flatten to one LHS slab so the
    # kernel sees a single matmul and a single stacked-input DMA.
    xp = jnp.pad(x, ((0, 0), (0, S_PAD - S), (0, 0)))
    yp = jnp.pad(y, ((0, 0), (0, S_PAD - S), (0, 0)))
    lhs = jnp.concatenate([xp, yp], axis=0).reshape(B_TOTAL * S_PAD, D)

    bytes_accessed = 4 * (lhs.size + packed_params.size + S_PAD * O_PAD)
    out = pl.pallas_call(
        simple_kernel,
        out_shape=jax.ShapeDtypeStruct((S_PAD, O_PAD), jnp.float32),
        in_specs=[pl.BlockSpec(memory_space=pltpu.MemorySpace.VMEM)] * 2,
        out_specs=pl.BlockSpec(memory_space=pltpu.MemorySpace.VMEM),
        cost_estimate=pl.CostEstimate(
            flops=2 * B_TOTAL * S_PAD * D * O_PAD,
            transcendentals=0,
            bytes_accessed=bytes_accessed),
    )(lhs, packed_params)
    return out[:S, :O]


def simple_reference(x, y, w1, b1, w2, b2):
    # Un-fused reference matching the PyTorch module exactly.
    def lin(a, w, b):
        return jnp.einsum("bsd,hd->bsh", a, w) + b
    o1 = lin(lin(x, w1, b1), w2, b2)
    o2 = lin(lin(y, w1, b1), w2, b2)
    return jnp.max(o1, axis=0) + jnp.max(o2, axis=0)


if __name__ == "__main__":
    key = jax.random.PRNGKey(0)
    kx, ky, kw1, kb1, kw2, kb2 = jax.random.split(key, 6)

    x = jax.random.normal(kx, (BX, S, D), dtype=jnp.float32)
    y = jax.random.normal(ky, (BY, S, D), dtype=jnp.float32)

    # Deterministic params (PyTorch Linear stores weight as (out, in)).
    w1 = jax.random.normal(kw1, (H, D), dtype=jnp.float32) * 0.1
    b1 = jax.random.normal(kb1, (H,), dtype=jnp.float32) * 0.1
    w2 = jax.random.normal(kw2, (O, H), dtype=jnp.float32) * 0.1
    b2 = jax.random.normal(kb2, (O,), dtype=jnp.float32) * 0.1

    # One-time parameter prep (hoisted out of the per-call forward path).
    packed_params = jax.block_until_ready(prepare_packed_params(w1, b1, w2, b2))

    out = jax.block_until_ready(simple_forward(x, y, packed_params))

    ref = simple_reference(x, y, w1, b1, w2, b2)
    assert out.shape == (S, O)
    assert jnp.allclose(out, ref, atol=1e-4, rtol=1e-4)

    print("KERNEL_OK")
</pallas_src>

<mosaic_0001>
module attributes {stable_mosaic.version = 11 : i64} {
  func.func @simple_kernel(%arg0: memref<504x10xf32, #tpu.memory_space<vmem>>, %arg1: memref<11x128xf32, #tpu.memory_space<vmem>>, %arg2: memref<56x128xf32, #tpu.memory_space<vmem>>) attributes {dimension_semantics = [], scalar_prefetch = 0 : i64, scratch_operands = 0 : i64, tpu.core_type = #tpu.core_type<tc>} {
    %c0 = arith.constant 0 : index
    %c0_0 = arith.constant 0 : index
    %0 = vector.load %arg1[%c0, %c0_0] : memref<11x128xf32, #tpu.memory_space<vmem>>, vector<10x128xf32>
    %c10 = arith.constant 10 : index
    %c0_1 = arith.constant 0 : index
    %1 = vector.load %arg1[%c10, %c0_1] : memref<11x128xf32, #tpu.memory_space<vmem>>, vector<1x128xf32>
    %c0_2 = arith.constant 0 : index
    %c0_3 = arith.constant 0 : index
    %2 = vector.load %arg0[%c0_2, %c0_3] : memref<504x10xf32, #tpu.memory_space<vmem>>, vector<504x10xf32>
    %cst = arith.constant dense<0.000000e+00> : vector<504x128xf32>
    %3 = tpu.matmul %2, %0, %cst {dimension_numbers = #tpu.dot_dimension_numbers<[1], [0], [0], [1], [0, 0, 1, 1], [], []>} : vector<504x10xf32>, vector<10x128xf32>, vector<504x128xf32> -> vector<504x128xf32>
    %4 = vector.extract_strided_slice %3 {offsets = [0, 0], sizes = [56, 128], strides = [1, 1]} : vector<504x128xf32> to vector<56x128xf32>
    %5 = vector.extract_strided_slice %3 {offsets = [56, 0], sizes = [56, 128], strides = [1, 1]} : vector<504x128xf32> to vector<56x128xf32>
    %6 = arith.maximumf %4, %5 : vector<56x128xf32>
    %7 = vector.extract_strided_slice %3 {offsets = [112, 0], sizes = [56, 128], strides = [1, 1]} : vector<504x128xf32> to vector<56x128xf32>
    %8 = arith.maximumf %6, %7 : vector<56x128xf32>
    %9 = vector.extract_strided_slice %3 {offsets = [168, 0], sizes = [56, 128], strides = [1, 1]} : vector<504x128xf32> to vector<56x128xf32>
    %10 = arith.maximumf %8, %9 : vector<56x128xf32>
    %11 = vector.extract_strided_slice %3 {offsets = [224, 0], sizes = [56, 128], strides = [1, 1]} : vector<504x128xf32> to vector<56x128xf32>
    %12 = vector.extract_strided_slice %3 {offsets = [280, 0], sizes = [56, 128], strides = [1, 1]} : vector<504x128xf32> to vector<56x128xf32>
    %13 = arith.maximumf %11, %12 : vector<56x128xf32>
    %14 = vector.extract_strided_slice %3 {offsets = [336, 0], sizes = [56, 128], strides = [1, 1]} : vector<504x128xf32> to vector<56x128xf32>
    %15 = arith.maximumf %13, %14 : vector<56x128xf32>
    %16 = vector.extract_strided_slice %3 {offsets = [392, 0], sizes = [56, 128], strides = [1, 1]} : vector<504x128xf32> to vector<56x128xf32>
    %17 = arith.maximumf %15, %16 : vector<56x128xf32>
    %18 = vector.extract_strided_slice %3 {offsets = [448, 0], sizes = [56, 128], strides = [1, 1]} : vector<504x128xf32> to vector<56x128xf32>
    %19 = arith.maximumf %17, %18 : vector<56x128xf32>
    %20 = arith.addf %10, %19 : vector<56x128xf32>
    %21 = vector.broadcast %1 : vector<1x128xf32> to vector<56x128xf32>
    %22 = arith.addf %20, %21 : vector<56x128xf32>
    %c0_4 = arith.constant 0 : index
    %c0_5 = arith.constant 0 : index
    %23 = vector.load %arg2[%c0_4, %c0_5] : memref<56x128xf32, #tpu.memory_space<vmem>>, vector<56x128xf32>
    tpu.vector_store %arg2[%c0_4, %c0_5], %22 {strides = array<i32>} : memref<56x128xf32, #tpu.memory_space<vmem>>, vector<56x128xf32>,
    return
  }
}

</mosaic_0001>

<bundles_post_ra>
// kernel: simple_forward.1
= control target key start
LH: loop header
LB: loop body
LE: loop exit
PB: predicated region body
PF: predicated region fallthrough
CT: control target
= control target key end

     0   :  { %vm267_vm0 = vcmask 1041408   ;;  %v1062_v0 = vmov 0.0|0.0   ;;  %vm1063_vm1 = vmmov 1   ;;  %vm1064_vm3 = vmmov 0   ;;  %s1603_s1 = inlined_call_operand.vmem [shape: f32[11,128], index: 1, kind: input, shape index: {}]   ;;  %s1604_s0 = inlined_call_operand.vmem [shape: f32[504,10], index: 0, kind: input, shape index: {}]   ;;  %s1605_s2 = inlined_call_operand.vmem [shape: f32[56,128], index: 2, kind: output, shape index: {}]  }
   0x1   :  { %1052 = vmatprep.subr.bf16.mxu0 %v1062_v0  ;;  %1056 = vmatprep.subr.bf16.mxu1 %v1062_v0  ;;  %v11_v1 = vld [vmem:[%s1603_s1] sm:$0xff]  ;;  %v12_v2 = vld [vmem:[%s1603_s1 + $0x8] sm:$0x3]  ;;  %vm1054_vm2 = vmpackc.low %vm267_vm0, %vm1063_vm1  ;;  %v1065_v4 = vmov 0.0   ;;  %vm77_vm4 = vcmask 80896  }
   0x2   :  { %v1053_v3 = vpack.c.bf16 %v12_v2, %v11_v1  ;;  %863 = vmatprep.mubr.msk.f32.mxu0 %vm1064_vm3, %v1065_v4  ;;  %959 = vmatprep.mubr.msk.f32.mxu1 %vm1064_vm3, %v1065_v4  ;;  %v14_v5 = vld [vmem:[%s1604_s0] sm:$0xff]  ;;  %v15_v7 = vld [vmem:[%s1604_s0 + $0x8] sm:$0xff]  ;;  %v16_v9 = vld [vmem:[%s1604_s0 + $0x10] sm:$0xff] }
   0x3   :  { %v46_v6 = vld [vmem:[%s1604_s0 + $0x100] sm:$0xff]  ;;  %v47_v8 = vld [vmem:[%s1604_s0 + $0x108] sm:$0xff]  ;;  %v48_v10 = vld [vmem:[%s1604_s0 + $0x110] sm:$0xff] }
   0x4   :  { %1055 = vmatpush3.bf16.msk.msra.mxu0 %vm1054_vm2, %v1053_v3  ;;  %1057 = vmatpush3.bf16.msk.msra.mxu1 %vm1054_vm2, %v1053_v3  ;;  %v17_v11 = vld [vmem:[%s1604_s0 + $0x18] sm:$0xff]  ;;  %v18_v13 = vld [vmem:[%s1604_s0 + $0x20] sm:$0xff]  ;;  %v19_v15 = vld [vmem:[%s1604_s0 + $0x28] sm:$0xff] }
   0x5   :  { %v49_v12 = vld [vmem:[%s1604_s0 + $0x118] sm:$0xff]  ;;  %v50_v14 = vld [vmem:[%s1604_s0 + $0x120] sm:$0xff]  ;;  %v51_v16 = vld [vmem:[%s1604_s0 + $0x128] sm:$0xff] }
   0x6   :  { %v20_v17 = vld [vmem:[%s1604_s0 + $0x30] sm:$0xff]  ;;  %v21_v19 = vld [vmem:[%s1604_s0 + $0x38] sm:$0xff]  ;;  %v22_v21 = vld [vmem:[%s1604_s0 + $0x40] sm:$0xff] }
   0x7   :  { %864 = vmatmul.mubr.msk.f32.vlgmr.msra.gmra.mrb[0].mxu0 %vm77_vm4, %v14_v5  ;;  %960 = vmatmul.mubr.msk.f32.vlgmr.msra.gmra.mrb[0].mxu1 %vm77_vm4, %v46_v6  ;;  %v52_v18 = vld [vmem:[%s1604_s0 + $0x130] sm:$0xff]  ;;  %v53_v20 = vld [vmem:[%s1604_s0 + $0x138] sm:$0xff]  ;;  %v54_v22 = vld [vmem:[%s1604_s0 + $0x140] sm:$0xff] }
   0x8   :  { %866 = vmatprep.mubr.msk.f32.mxu0 %vm1064_vm3, %v1065_v4  ;;  %962 = vmatprep.mubr.msk.f32.mxu1 %vm1064_vm3, %v1065_v4  ;;  %v23_v23 = vld [vmem:[%s1604_s0 + $0x48] sm:$0xff]  ;;  %v24_v25 = vld [vmem:[%s1604_s0 + $0x50] sm:$0xff]  ;;  %v25_v27 = vld [vmem:[%s1604_s0 + $0x58] sm:$0xff] }
   0x9   :  { %v55_v24 = vld [vmem:[%s1604_s0 + $0x148] sm:$0xff]  ;;  %v56_v26 = vld [vmem:[%s1604_s0 + $0x150] sm:$0xff]  ;;  %v57_v28 = vld [vmem:[%s1604_s0 + $0x158] sm:$0xff] }
   0xa   :  { %v26_v29 = vld [vmem:[%s1604_s0 + $0x60] sm:$0xff]  ;;  %v27_v31 = vld [vmem:[%s1604_s0 + $0x68] sm:$0xff]  ;;  %v28_v33 = vld [vmem:[%s1604_s0 + $0x70] sm:$0xff] }
   0xb   :  { %867 = vmatmul.mubr.msk.f32.gmra.mrb[2].mxu0 %vm77_vm4, %v15_v7  ;;  %963 = vmatmul.mubr.msk.f32.gmra.mrb[2].mxu1 %vm77_vm4, %v47_v8  ;;  %v58_v30 = vld [vmem:[%s1604_s0 + $0x160] sm:$0xff]  ;;  %v59_v32 = vld [vmem:[%s1604_s0 + $0x168] sm:$0xff]  ;;  %v60_v34 = vld [vmem:[%s1604_s0 + $0x170] sm:$0xff] }
   0xc   :  { %869 = vmatprep.mubr.msk.f32.mxu0 %vm1064_vm3, %v1065_v4  ;;  %965 = vmatprep.mubr.msk.f32.mxu1 %vm1064_vm3, %v1065_v4  ;;  %v29_v35 = vld [vmem:[%s1604_s0 + $0x78] sm:$0xff]  ;;  %v30_v37 = vld [vmem:[%s1604_s0 + $0x80] sm:$0xff]  ;;  %v31_v39 = vld [vmem:[%s1604_s0 + $0x88] sm:$0xff] }
   0xd   :  { %v61_v36 = vld [vmem:[%s1604_s0 + $0x178] sm:$0xff]  ;;  %v62_v38 = vld [vmem:[%s1604_s0 + $0x180] sm:$0xff]  ;;  %v63_v40 = vld [vmem:[%s1604_s0 + $0x188] sm:$0xff] }
   0xe   :  { %v32_v41 = vld [vmem:[%s1604_s0 + $0x90] sm:$0xff]  ;;  %v33_v43 = vld [vmem:[%s1604_s0 + $0x98] sm:$0xff]  ;;  %v34_v45 = vld [vmem:[%s1604_s0 + $0xa0] sm:$0xff] }
   0xf   :  { %870 = vmatmul.mubr.msk.f32.gmra.mrb[4].mxu0 %vm77_vm4, %v16_v9  ;;  %966 = vmatmul.mubr.msk.f32.gmra.mrb[4].mxu1 %vm77_vm4, %v48_v10  ;;  %v64_v42 = vld [vmem:[%s1604_s0 + $0x190] sm:$0xff]  ;;  %v65_v44 = vld [vmem:[%s1604_s0 + $0x198] sm:$0xff]  ;;  %v66_v46 = vld [vmem:[%s1604_s0 + $0x1a0] sm:$0xff] }
  0x10   :  { %872 = vmatprep.mubr.msk.f32.mxu0 %vm1064_vm3, %v1065_v4  ;;  %968 = vmatprep.mubr.msk.f32.mxu1 %vm1064_vm3, %v1065_v4  ;;  %v35_v47 = vld [vmem:[%s1604_s0 + $0xa8] sm:$0xff]  ;;  %v36_v49 = vld [vmem:[%s1604_s0 + $0xb0] sm:$0xff]  ;;  %v37_v51 = vld [vmem:[%s1604_s0 + $0xb8] sm:$0xff] }
  0x11   :  { %v67_v48 = vld [vmem:[%s1604_s0 + $0x1a8] sm:$0xff]  ;;  %v68_v50 = vld [vmem:[%s1604_s0 + $0x1b0] sm:$0xff]  ;;  %v69_v52 = vld [vmem:[%s1604_s0 + $0x1b8] sm:$0xff] }
  0x12   :  { %v38_v53 = vld [vmem:[%s1604_s0 + $0xc0] sm:$0xff]  ;;  %v39_v55 = vld [vmem:[%s1604_s0 + $0xc8] sm:$0xff]  ;;  %v40_v57 = vld [vmem:[%s1604_s0 + $0xd0] sm:$0xff] }
  0x13   :  { %873 = vmatmul.mubr.msk.f32.gmra.mrb[6].mxu0 %vm77_vm4, %v17_v11  ;;  %969 = vmatmul.mubr.msk.f32.gmra.mrb[6].mxu1 %vm77_vm4, %v49_v12  ;;  %v70_v54 = vld [vmem:[%s1604_s0 + $0x1c0] sm:$0xff]  ;;  %v71_v56 = vld [vmem:[%s1604_s0 + $0x1c8] sm:$0xff]  ;;  %v72_v58 = vld [vmem:[%s1604_s0 + $0x1d0] sm:$0xff] }
  0x14   :  { %875 = vmatprep.mubr.msk.f32.mxu0 %vm1064_vm3, %v1065_v4  ;;  %971 = vmatprep.mubr.msk.f32.mxu1 %vm1064_vm3, %v1065_v4  ;;  %v41_v59 = vld [vmem:[%s1604_s0 + $0xd8] sm:$0xff]  ;;  %v42_v61 = vld [vmem:[%s1604_s0 + $0xe0] sm:$0xff]  ;;  %v43_v63 = vld [vmem:[%s1604_s0 + $0xe8] sm:$0xff] }
  0x15   :  { %v73_v60 = vld [vmem:[%s1604_s0 + $0x1d8] sm:$0xff]  ;;  %v74_v62 = vld [vmem:[%s1604_s0 + $0x1e0] sm:$0xff]  ;;  %v75_v0 = vld [vmem:[%s1604_s0 + $0x1e8] sm:$0xff] }
  0x16   :  { %v44_v1 = vld [vmem:[%s1604_s0 + $0xf0] sm:$0xff]  ;;  %v45_v3 = vld [vmem:[%s1604_s0 + $0xf8] sm:$0xff] }
  0x17   :  { %876 = vmatmul.mubr.msk.f32.gmra.mrb[8].mxu0 %vm77_vm4, %v18_v13  ;;  %972 = vmatmul.mubr.msk.f32.gmra.mrb[8].mxu1 %vm77_vm4, %v50_v14  ;;  %v76_v2 = vld [vmem:[%s1604_s0 + $0x1f0] sm:$0xff] }
  0x18   :  { %878 = vmatprep.mubr.msk.f32.mxu0 %vm1064_vm3, %v1065_v4  ;;  %974 = vmatprep.mubr.msk.f32.mxu1 %vm1064_vm3, %v1065_v4 }
  0x1b   :  { %879 = vmatmul.mubr.msk.f32.gmra.mrb[10].mxu0 %vm77_vm4, %v19_v15  ;;  %975 = vmatmul.mubr.msk.f32.gmra.mrb[10].mxu1 %vm77_vm4, %v51_v16 }
  0x1c   :  { %881 = vmatprep.mubr.msk.f32.mxu0 %vm1064_vm3, %v1065_v4  ;;  %977 = vmatprep.mubr.msk.f32.mxu1 %vm1064_vm3, %v1065_v4 }
  0x1f   :  { %882 = vmatmul.mubr.msk.f32.gmra.mrb[12].mxu0 %vm77_vm4, %v20_v17  ;;  %978 = vmatmul.mubr.msk.f32.gmra.mrb[12].mxu1 %vm77_vm4, %v52_v18 }
  0x20   :  { %884 = vmatprep.mubr.msk.f32.mxu0 %vm1064_vm3, %v1065_v4  ;;  %980 = vmatprep.mubr.msk.f32.mxu1 %vm1064_vm3, %v1065_v4 }
  0x23   :  { %885 = vmatmul.mubr.msk.f32.gmra.mrb[14].mxu0 %vm77_vm4, %v21_v19  ;;  %981 = vmatmul.mubr.msk.f32.gmra.mrb[14].mxu1 %vm77_vm4, %v53_v20 }
  0x24   :  { %887 = vmatprep.mubr.msk.f32.mxu0 %vm1064_vm3, %v1065_v4  ;;  %983 = vmatprep.mubr.msk.f32.mxu1 %vm1064_vm3, %v1065_v4 }
  0x27   :  { %888 = vmatmul.mubr.msk.f32.gmra.mrb[16].mxu0 %vm77_vm4, %v22_v21  ;;  %984 = vmatmul.mubr.msk.f32.gmra.mrb[16].mxu1 %vm77_vm4, %v54_v22 }
  0x28   :  { %890 = vmatprep.mubr.msk.f32.mxu0 %vm1064_vm3, %v1065_v4  ;;  %986 = vmatprep.mubr.msk.f32.mxu1 %vm1064_vm3, %v1065_v4 }
  0x2b   :  { %891 = vmatmul.mubr.msk.f32.gmra.mrb[18].mxu0 %vm77_vm4, %v23_v23  ;;  %987 = vmatmul.mubr.msk.f32.gmra.mrb[18].mxu1 %vm77_vm4, %v55_v24 }
  0x2c   :  { %893 = vmatprep.mubr.msk.f32.mxu0 %vm1064_vm3, %v1065_v4  ;;  %989 = vmatprep.mubr.msk.f32.mxu1 %vm1064_vm3, %v1065_v4 }
  0x2f   :  { %894 = vmatmul.mubr.msk.f32.gmra.mrb[20].mxu0 %vm77_vm4, %v24_v25  ;;  %990 = vmatmul.mubr.msk.f32.gmra.mrb[20].mxu1 %vm77_vm4, %v56_v26 }
  0x30   :  { %896 = vmatprep.mubr.msk.f32.mxu0 %vm1064_vm3, %v1065_v4  ;;  %992 = vmatprep.mubr.msk.f32.mxu1 %vm1064_vm3, %v1065_v4 }
  0x33   :  { %897 = vmatmul.mubr.msk.f32.gmra.mrb[22].mxu0 %vm77_vm4, %v25_v27  ;;  %993 = vmatmul.mubr.msk.f32.gmra.mrb[22].mxu1 %vm77_vm4, %v57_v28 }
  0x34   :  { %899 = vmatprep.mubr.msk.f32.mxu0 %vm1064_vm3, %v1065_v4  ;;  %995 = vmatprep.mubr.msk.f32.mxu1 %vm1064_vm3, %v1065_v4 }
  0x37   :  { %900 = vmatmul.mubr.msk.f32.gmra.mrb[24].mxu0 %vm77_vm4, %v26_v29  ;;  %996 = vmatmul.mubr.msk.f32.gmra.mrb[24].mxu1 %vm77_vm4, %v58_v30 }
  0x38   :  { %902 = vmatprep.mubr.msk.f32.mxu0 %vm1064_vm3, %v1065_v4  ;;  %998 = vmatprep.mubr.msk.f32.mxu1 %vm1064_vm3, %v1065_v4 }
  0x3b   :  { %903 = vmatmul.mubr.msk.f32.gmra.mrb[26].mxu0 %vm77_vm4, %v27_v31  ;;  %999 = vmatmul.mubr.msk.f32.gmra.mrb[26].mxu1 %vm77_vm4, %v59_v32 }
  0x3c   :  { %905 = vmatprep.mubr.msk.f32.mxu0 %vm1064_vm3, %v1065_v4  ;;  %1001 = vmatprep.mubr.msk.f32.mxu1 %vm1064_vm3, %v1065_v4 }
  0x3f   :  { %906 = vmatmul.mubr.msk.f32.gmra.mrb[28].mxu0 %vm77_vm4, %v28_v33  ;;  %1002 = vmatmul.mubr.msk.f32.gmra.mrb[28].mxu1 %vm77_vm4, %v60_v34 }
  0x40   :  { %908 = vmatprep.mubr.msk.f32.mxu0 %vm1064_vm3, %v1065_v4  ;;  %1004 = vmatprep.mubr.msk.f32.mxu1 %vm1064_vm3, %v1065_v4 }
  0x43   :  { %909 = vmatmul.mubr.msk.f32.gmra.mrb[30].mxu0 %vm77_vm4, %v29_v35  ;;  %1005 = vmatmul.mubr.msk.f32.gmra.mrb[30].mxu1 %vm77_vm4, %v61_v36 }
  0x44   :  { %911 = vmatprep.mubr.msk.f32.mxu0 %vm1064_vm3, %v1065_v4  ;;  %1007 = vmatprep.mubr.msk.f32.mxu1 %vm1064_vm3, %v1065_v4 }
  0x47   :  { %912 = vmatmul.mubr.msk.f32.gmra.mrb[32].mxu0 %vm77_vm4, %v30_v37  ;;  %1008 = vmatmul.mubr.msk.f32.gmra.mrb[32].mxu1 %vm77_vm4, %v62_v38 }
  0x48   :  { %914 = vmatprep.mubr.msk.f32.mxu0 %vm1064_vm3, %v1065_v4  ;;  %1010 = vmatprep.mubr.msk.f32.mxu1 %vm1064_vm3, %v1065_v4 }
  0x4b   :  { %915 = vmatmul.mubr.msk.f32.gmra.mrb[34].mxu0 %vm77_vm4, %v31_v39  ;;  %1011 = vmatmul.mubr.msk.f32.gmra.mrb[34].mxu1 %vm77_vm4, %v63_v40 }
  0x4c   :  { %917 = vmatprep.mubr.msk.f32.mxu0 %vm1064_vm3, %v1065_v4  ;;  %1013 = vmatprep.mubr.msk.f32.mxu1 %vm1064_vm3, %v1065_v4 }
  0x4f   :  { %918 = vmatmul.mubr.msk.f32.gmra.mrb[36].mxu0 %vm77_vm4, %v32_v41  ;;  %1014 = vmatmul.mubr.msk.f32.gmra.mrb[36].mxu1 %vm77_vm4, %v64_v42 }
  0x50   :  { %920 = vmatprep.mubr.msk.f32.mxu0 %vm1064_vm3, %v1065_v4  ;;  %1016 = vmatprep.mubr.msk.f32.mxu1 %vm1064_vm3, %v1065_v4 }
  0x53   :  { %921 = vmatmul.mubr.msk.f32.gmra.mrb[38].mxu0 %vm77_vm4, %v33_v43  ;;  %1017 = vmatmul.mubr.msk.f32.gmra.mrb[38].mxu1 %vm77_vm4, %v65_v44 }
  0x54   :  { %923 = vmatprep.mubr.msk.f32.mxu0 %vm1064_vm3, %v1065_v4  ;;  %1019 = vmatprep.mubr.msk.f32.mxu1 %vm1064_vm3, %v1065_v4 }
  0x57   :  { %924 = vmatmul.mubr.msk.f32.gmra.mrb[40].mxu0 %vm77_vm4, %v34_v45  ;;  %1020 = vmatmul.mubr.msk.f32.gmra.mrb[40].mxu1 %vm77_vm4, %v66_v46 }
  0x58   :  { %926 = vmatprep.mubr.msk.f32.mxu0 %vm1064_vm3, %v1065_v4  ;;  %1022 = vmatprep.mubr.msk.f32.mxu1 %vm1064_vm3, %v1065_v4 }
  0x5b   :  { %927 = vmatmul.mubr.msk.f32.gmra.mrb[42].mxu0 %vm77_vm4, %v35_v47  ;;  %1023 = vmatmul.mubr.msk.f32.gmra.mrb[42].mxu1 %vm77_vm4, %v67_v48 }
  0x5c   :  { %929 = vmatprep.mubr.msk.f32.mxu0 %vm1064_vm3, %v1065_v4  ;;  %1025 = vmatprep.mubr.msk.f32.mxu1 %vm1064_vm3, %v1065_v4 }
  0x5f   :  { %930 = vmatmul.mubr.msk.f32.gmra.mrb[44].mxu0 %vm77_vm4, %v36_v49  ;;  %1026 = vmatmul.mubr.msk.f32.gmra.mrb[44].mxu1 %vm77_vm4, %v68_v50 }
  0x60   :  { %932 = vmatprep.mubr.msk.f32.mxu0 %vm1064_vm3, %v1065_v4  ;;  %1028 = vmatprep.mubr.msk.f32.mxu1 %vm1064_vm3, %v1065_v4 }
  0x63   :  { %933 = vmatmul.mubr.msk.f32.gmra.mrb[46].mxu0 %vm77_vm4, %v37_v51  ;;  %1029 = vmatmul.mubr.msk.f32.gmra.mrb[46].mxu1 %vm77_vm4, %v69_v52 }
  0x64   :  { %935 = vmatprep.mubr.msk.f32.mxu0 %vm1064_vm3, %v1065_v4  ;;  %1031 = vmatprep.mubr.msk.f32.mxu1 %vm1064_vm3, %v1065_v4 }
  0x67   :  { %936 = vmatmul.mubr.msk.f32.gmra.mrb[48].mxu0 %vm77_vm4, %v38_v53  ;;  %1032 = vmatmul.mubr.msk.f32.gmra.mrb[48].mxu1 %vm77_vm4, %v70_v54 }
  0x68   :  { %938 = vmatprep.mubr.msk.f32.mxu0 %vm1064_vm3, %v1065_v4  ;;  %1034 = vmatprep.mubr.msk.f32.mxu1 %vm1064_vm3, %v1065_v4 }
  0x6b   :  { %939 = vmatmul.mubr.msk.f32.gmra.mrb[50].mxu0 %vm77_vm4, %v39_v55  ;;  %1035 = vmatmul.mubr.msk.f32.gmra.mrb[50].mxu1 %vm77_vm4, %v71_v56 }
  0x6c   :  { %941 = vmatprep.mubr.msk.f32.mxu0 %vm1064_vm3, %v1065_v4  ;;  %1037 = vmatprep.mubr.msk.f32.mxu1 %vm1064_vm3, %v1065_v4 }
  0x6f   :  { %942 = vmatmul.mubr.msk.f32.gmra.mrb[52].mxu0 %vm77_vm4, %v40_v57  ;;  %1038 = vmatmul.mubr.msk.f32.gmra.mrb[52].mxu1 %vm77_vm4, %v72_v58 }
  0x70   :  { %944 = vmatprep.mubr.msk.f32.mxu0 %vm1064_vm3, %v1065_v4  ;;  %1040 = vmatprep.mubr.msk.f32.mxu1 %vm1064_vm3, %v1065_v4 }
  0x73   :  { %945 = vmatmul.mubr.msk.f32.gmra.mrb[54].mxu0 %vm77_vm4, %v41_v59  ;;  %1041 = vmatmul.mubr.msk.f32.gmra.mrb[54].mxu1 %vm77_vm4, %v73_v60 }
  0x74   :  { %947 = vmatprep.mubr.msk.f32.mxu0 %vm1064_vm3, %v1065_v4  ;;  %1043 = vmatprep.mubr.msk.f32.mxu1 %vm1064_vm3, %v1065_v4 }
  0x77   :  { %948 = vmatmul.mubr.msk.f32.gmra.mrb[56].mxu0 %vm77_vm4, %v42_v61  ;;  %1044 = vmatmul.mubr.msk.f32.gmra.mrb[56].mxu1 %vm77_vm4, %v74_v62 }
  0x78   :  { %950 = vmatprep.mubr.msk.f32.mxu0 %vm1064_vm3, %v1065_v4  ;;  %1046 = vmatprep.mubr.msk.f32.mxu1 %vm1064_vm3, %v1065_v4 }
  0x7b   :  { %951 = vmatmul.mubr.msk.f32.gmra.mrb[58].mxu0 %vm77_vm4, %v43_v63  ;;  %1047 = vmatmul.mubr.msk.f32.gmra.mrb[58].mxu1 %vm77_vm4, %v75_v0 }
  0x7c   :  { %953 = vmatprep.mubr.msk.f32.mxu0 %vm1064_vm3, %v1065_v4  ;;  %1049 = vmatprep.mubr.msk.f32.mxu1 %vm1064_vm3, %v1065_v4 }
  0x7f   :  { %954 = vmatmul.mubr.msk.f32.gmra.mrb[60].mxu0 %vm77_vm4, %v44_v1  ;;  %1050 = vmatmul.mubr.msk.f32.gmra.mrb[60].mxu1 %vm77_vm4, %v76_v2 }
  0x80   :  { %956 = vmatprep.mubr.msk.f32.mxu0 %vm1064_vm3, %v1065_v4 }
  0x83   :  { %957 = vmatmul.mubr.msk.f32.gmra.mrb[62].mxu0 %vm77_vm4, %v45_v3 }
  0xda   :  { %v1465_v5 = vpop.f32.mrb[0].mxu0  ;;  %v1467_v6 = vpop.f32.mrb[0].mxu1 }
  0xdb   :  { %v865_v7 = vpop.f32.mrb[1].mxu0  ;;  %v961_v8 = vpop.f32.mrb[1].mxu1 }
  0xde   :  { %v1469_v9 = vpop.f32.mrb[2].mxu0  ;;  %v1471_v10 = vpop.f32.mrb[2].mxu1 }
  0xdf   :  { %v868_v11 = vpop.f32.mrb[3].mxu0  ;;  %v964_v12 = vpop.f32.mrb[3].mxu1 }
  0xe2   :  { %v1473_v13 = vpop.f32.mrb[4].mxu0  ;;  %v1475_v4 = vpop.f32.mrb[4].mxu1 }
  0xe3   :  { %v871_v14 = vpop.f32.mrb[5].mxu0  ;;  %v967_v15 = vpop.f32.mrb[5].mxu1 }
  0xe6   :  { %v1477_v16 = vpop.f32.mrb[6].mxu0  ;;  %v1479_v17 = vpop.f32.mrb[6].mxu1 }
  0xe7   :  { %v874_v18 = vpop.f32.mrb[7].mxu0  ;;  %v970_v19 = vpop.f32.mrb[7].mxu1 }
  0xea   :  { %v1481_v20 = vpop.f32.mrb[8].mxu0  ;;  %v1483_v21 = vpop.f32.mrb[8].mxu1 }
  0xeb   :  { %v877_v22 = vpop.f32.mrb[9].mxu0  ;;  %v973_v23 = vpop.f32.mrb[9].mxu1 }
  0xee   :  { %v1485_v24 = vpop.f32.mrb[10].mxu0  ;;  %v1487_v25 = vpop.f32.mrb[10].mxu1 }
  0xef   :  { %v880_v26 = vpop.f32.mrb[11].mxu0  ;;  %v976_v27 = vpop.f32.mrb[11].mxu1 }
  0xf2   :  { %v1489_v28 = vpop.f32.mrb[12].mxu0  ;;  %v1491_v29 = vpop.f32.mrb[12].mxu1 }
  0xf3   :  { %v883_v30 = vpop.f32.mrb[13].mxu0  ;;  %v979_v31 = vpop.f32.mrb[13].mxu1 }
  0xf6   :  { %v372_v32 = vpop.f32.mrb[14].mxu0  ;;  %v532_v33 = vpop.f32.mrb[14].mxu1 }
  0xf7   :  { %v651_v34 = vmax.f32 %v1465_v5, %v372_v32  ;;  %v676_v35 = vmax.f32 %v1467_v6, %v532_v33  ;;  %v886_v36 = vpop.f32.mrb[15].mxu0  ;;  %v982_v37 = vpop.f32.mrb[15].mxu1 }
  0xfa   :  { %v377_v38 = vpop.f32.mrb[16].mxu0  ;;  %v537_v39 = vpop.f32.mrb[16].mxu1 }
  0xfb   :  { %v652_v40 = vmax.f32 %v1469_v9, %v377_v38  ;;  %v677_v41 = vmax.f32 %v1471_v10, %v537_v39  ;;  %v889_v42 = vpop.f32.mrb[17].mxu0  ;;  %v985_v43 = vpop.f32.mrb[17].mxu1 }
  0xfe   :  { %v382_v44 = vpop.f32.mrb[18].mxu0  ;;  %v542_v45 = vpop.f32.mrb[18].mxu1 }
  0xff   :  { %v653_v46 = vmax.f32 %v1473_v13, %v382_v44  ;;  %v678_v47 = vmax.f32 %v1475_v4, %v542_v45  ;;  %v892_v48 = vpop.f32.mrb[19].mxu0  ;;  %v988_v49 = vpop.f32.mrb[19].mxu1 }
 0x102   :  { %v387_v50 = vpop.f32.mrb[20].mxu0  ;;  %v1499_v51 = vpop.f32.mrb[20].mxu1 }
 0x103   :  { %v654_v52 = vmax.f32 %v1477_v16, %v387_v50  ;;  %v895_v53 = vpop.f32.mrb[21].mxu0  ;;  %v991_v54 = vpop.f32.mrb[21].mxu1 }
 0x106   :  { %v392_v55 = vpop.f32.mrb[22].mxu0  ;;  %v1502_v56 = vpop.f32.mrb[22].mxu1 }
 0x107   :  { %v655_v57 = vmax.f32 %v1481_v20, %v392_v55  ;;  %v898_v58 = vpop.f32.mrb[23].mxu0  ;;  %v994_v59 = vpop.f32.mrb[23].mxu1 }
 0x10a   :  { %v397_v60 = vpop.f32.mrb[24].mxu0  ;;  %v1505_v61 = vpop.f32.mrb[24].mxu1 }
 0x10b   :  { %v656_v62 = vmax.f32 %v1485_v24, %v397_v60  ;;  %v901_v63 = vpop.f32.mrb[25].mxu0  ;;  %v997_v0 = vpop.f32.mrb[25].mxu1 }
 0x10e   :  { %v402_v1 = vpop.f32.mrb[26].mxu0  ;;  %v1508_v2 = vpop.f32.mrb[26].mxu1 }
 0x10f   :  { %v657_v3 = vmax.f32 %v1489_v28, %v402_v1  ;;  %v904_v5 = vpop.f32.mrb[27].mxu0  ;;  %v1000_v6 = vpop.f32.mrb[27].mxu1 }
 0x112   :  { %v407_v7 = vpop.f32.mrb[28].mxu0  ;;  %v567_v8 = vpop.f32.mrb[28].mxu1 }
 0x113   :  { %v1511_v9 = vmax.f32 %v651_v34, %v407_v7  ;;  %v1513_v10 = vmax.f32 %v676_v35, %v567_v8  ;;  %v907_v11 = vpop.f32.mrb[29].mxu0  ;;  %v1003_v12 = vpop.f32.mrb[29].mxu1 }
 0x116   :  { %v412_v13 = vpop.f32.mrb[30].mxu0  ;;  %v572_v4 = vpop.f32.mrb[30].mxu1 }
 0x117   :  { %v1515_v14 = vmax.f32 %v652_v40, %v412_v13  ;;  %v1517_v15 = vmax.f32 %v677_v41, %v572_v4  ;;  %v910_v16 = vpop.f32.mrb[31].mxu0  ;;  %v1006_v18 = vpop.f32.mrb[31].mxu1 }
 0x11a   :  { %v417_v19 = vpop.f32.mrb[32].mxu0  ;;  %v577_v20 = vpop.f32.mrb[32].mxu1 }
 0x11b   :  { %v1519_v22 = vmax.f32 %v653_v46, %v417_v19  ;;  %v1521_v23 = vmax.f32 %v678_v47, %v577_v20  ;;  %v913_v24 = vpop.f32.mrb[33].mxu0  ;;  %v1009_v26 = vpop.f32.mrb[33].mxu1 }
 0x11e   :  { %v422_v27 = vpop.f32.mrb[34].mxu0  ;;  %v1523_v28 = vpop.f32.mrb[34].mxu1 }
 0x11f   :  { %v1525_v30 = vmax.f32 %v654_v52, %v422_v27  ;;  %v916_v31 = vpop.f32.mrb[35].mxu0  ;;  %v1012_v32 = vpop.f32.mrb[35].mxu1 }
 0x122   :  { %v427_v33 = vpop.f32.mrb[36].mxu0  ;;  %v1527_v34 = vpop.f32.mrb[36].mxu1 }
 0x123   :  { %v662_v35 = vmax.f32 %v655_v57, %v427_v33  ;;  %v919_v36 = vpop.f32.mrb[37].mxu0  ;;  %v1015_v37 = vpop.f32.mrb[37].mxu1 }
 0x126   :  { %v432_v38 = vpop.f32.mrb[38].mxu0  ;;  %v1529_v39 = vpop.f32.mrb[38].mxu1 }
 0x127   :  { %v1531_v40 = vmax.f32 %v656_v62, %v432_v38  ;;  %v922_v41 = vpop.f32.mrb[39].mxu0  ;;  %v1018_v42 = vpop.f32.mrb[39].mxu1 }
 0x12a   :  { %v437_v43 = vpop.f32.mrb[40].mxu0  ;;  %v1533_v44 = vpop.f32.mrb[40].mxu1 }
 0x12b   :  { %v1535_v45 = vmax.f32 %v657_v3, %v437_v43  ;;  %v925_v46 = vpop.f32.mrb[41].mxu0  ;;  %v1021_v47 = vpop.f32.mrb[41].mxu1  ;;  %v793_v43 = vld [vmem:[%s1603_s1 + $0xa] ss:$0 sm:$0xff] }
 0x12e   :  { %v1537_v48 = vpop.f32.mrb[42].mxu0  ;;  %v602_v49 = vpop.f32.mrb[42].mxu1 }
 0x12f   :  { %v665_v50 = vmax.f32 %v1511_v9, %v1537_v48  ;;  %v690_v52 = vmax.f32 %v1513_v10, %v602_v49  ;;  %v928_v53 = vpop.f32.mrb[43].mxu0  ;;  %v1024_v54 = vpop.f32.mrb[43].mxu1 }
 0x132   :  { %v1542_v55 = vpop.f32.mrb[44].mxu0  ;;  %v607_v57 = vpop.f32.mrb[44].mxu1 }
 0x133   :  { %v666_v58 = vmax.f32 %v1515_v14, %v1542_v55  ;;  %v691_v59 = vmax.f32 %v1517_v15, %v607_v57  ;;  %v931_v60 = vpop.f32.mrb[45].mxu0  ;;  %v1027_v62 = vpop.f32.mrb[45].mxu1 }
 0x136   :  { %v1547_v63 = vpop.f32.mrb[46].mxu0  ;;  %v612_v0 = vpop.f32.mrb[46].mxu1 }
 0x137   :  { %v667_v1 = vmax.f32 %v1519_v22, %v1547_v63  ;;  %v692_v3 = vmax.f32 %v1521_v23, %v612_v0  ;;  %v934_v5 = vpop.f32.mrb[47].mxu0  ;;  %v1030_v6 = vpop.f32.mrb[47].mxu1 }
 0x13a   :  { %v1552_v7 = vpop.f32.mrb[48].mxu0  ;;  %v617_v8 = vpop.f32.mrb[48].mxu1 }
 0x13b   :  { %v668_v9 = vmax.f32 %v1525_v30, %v1552_v7  ;;  %v937_v10 = vpop.f32.mrb[49].mxu0  ;;  %v1033_v11 = vpop.f32.mrb[49].mxu1 }
 0x13e   :  { %v462_v12 = vpop.f32.mrb[50].mxu0  ;;  %v622_v13 = vpop.f32.mrb[50].mxu1 }
 0x13f   :  { %v669_v4 = vmax.f32 %v662_v35, %v462_v12  ;;  %v940_v15 = vpop.f32.mrb[51].mxu0  ;;  %v1036_v16 = vpop.f32.mrb[51].mxu1 }
 0x142   :  { %v467_v18 = vpop.f32.mrb[52].mxu0  ;;  %v627_v19 = vpop.f32.mrb[52].mxu1 }
 0x143   :  { %v670_v20 = vmax.f32 %v1531_v40, %v467_v18  ;;  %v943_v23 = vpop.f32.mrb[53].mxu0  ;;  %v1039_v24 = vpop.f32.mrb[53].mxu1 }
 0x146   :  { %v472_v26 = vpop.f32.mrb[54].mxu0  ;;  %v632_v27 = vpop.f32.mrb[54].mxu1 }
 0x147   :  { %v671_v31 = vmax.f32 %v1535_v45, %v472_v26  ;;  %v946_v32 = vpop.f32.mrb[55].mxu0  ;;  %v1042_v33 = vpop.f32.mrb[55].mxu1 }
 0x14a   :  { %v477_v36 = vpop.f32.mrb[56].mxu0  ;;  %v637_v37 = vpop.f32.mrb[56].mxu1 }
 0x14b   :  { %v672_v38 = vmax.f32 %v477_v36, %v1479_v17  ;;  %v697_v41 = vmax.f32 %v690_v52, %v637_v37  ;;  %v949_v35 = vpop.f32.mrb[57].mxu0  ;;  %v1045_v42 = vpop.f32.mrb[57].mxu1 }
 0x14d   :  { %v679_v40 = vmax.f32 %v672_v38, %v1499_v51  ;;  %v704_v46 = vadd.f32 %v697_v41, %v669_v4 }
 0x14e   :  { %v482_v47 = vpop.f32.mrb[58].mxu0  ;;  %v642_v48 = vpop.f32.mrb[58].mxu1 }
 0x14f   :  { %v686_v45 = vmax.f32 %v679_v40, %v1523_v28  ;;  %v715_v49 = vadd.f32 %v793_v43, %v704_v46  ;;  %v673_v53 = vmax.f32 %v482_v47, %v1483_v21  ;;  %v698_v54 = vmax.f32 %v691_v59, %v642_v48  ;;  %v952_v57 = vpop.f32.mrb[59].mxu0  ;;  %v1048_v17 = vpop.f32.mrb[59].mxu1 }
 0x151   :  { %v693_v52 = vmax.f32 %v686_v45, %v617_v8  ;;  %722 = vst [vmem:[%s1605_s2 + $0x20] sm:$0xff] %v715_v49  ;;  %v680_v60 = vmax.f32 %v673_v53, %v1502_v56  ;;  %v705_v62 = vadd.f32 %v698_v54, %v670_v20 }
 0x152   :  { %v487_v51 = vpop.f32.mrb[60].mxu0  ;;  %v647_v0 = vpop.f32.mrb[60].mxu1 }
 0x153   :  { %v700_v5 = vadd.f32 %v693_v52, %v665_v50  ;;  %v687_v6 = vmax.f32 %v680_v60, %v1527_v34  ;;  %v716_v28 = vadd.f32 %v793_v43, %v705_v62  ;;  %v674_v10 = vmax.f32 %v487_v51, %v1487_v25  ;;  %v955_v21 = vpop.f32.mrb[61].mxu0  ;;  %v1051_v59 = vpop.f32.mrb[61].mxu1 }
 0x154   :  { %v699_v11 = vmax.f32 %v692_v3, %v647_v0 }
 0x155   :  { %v711_v12 = vadd.f32 %v793_v43, %v700_v5  ;;  %v694_v8 = vmax.f32 %v687_v6, %v622_v13  ;;  %723 = vst [vmem:[%s1605_s2 + $0x28] sm:$0xff] %v716_v28  ;;  %v681_v56 = vmax.f32 %v674_v10, %v1505_v61 }
 0x156   :  { %v706_v4 = vadd.f32 %v699_v11, %v671_v31  ;;  %v492_v15 = vpop.f32.mrb[62].mxu0 }
 0x157   :  { %718 = vst [vmem:[%s1605_s2] sm:$0xff] %v711_v12  ;;  %v701_v25 = vadd.f32 %v694_v8, %v666_v58  ;;  %v688_v34 = vmax.f32 %v681_v56, %v1529_v39  ;;  %v675_v50 = vmax.f32 %v492_v15, %v1491_v29  ;;  %v958_v3 = vpop.f32.mrb[63].mxu0 }
 0x158   :  { %v717_v13 = vadd.f32 %v793_v43, %v706_v4 }
 0x159   :  { %v712_v16 = vadd.f32 %v793_v43, %v701_v25  ;;  %v695_v18 = vmax.f32 %v688_v34, %v627_v19  ;;  %v682_v61 = vmax.f32 %v675_v50, %v1508_v2 }
 0x15a   :  { %724 = vst [vmem:[%s1605_s2 + $0x30] sm:$0xff] %v717_v13 }
 0x15b   :  { %719 = vst [vmem:[%s1605_s2 + $0x8] sm:$0xff] %v712_v16  ;;  %v702_v14 = vadd.f32 %v695_v18, %v667_v1  ;;  %v689_v29 = vmax.f32 %v682_v61, %v1533_v44 }
 0x15d   :  { %v713_v39 = vadd.f32 %v793_v43, %v702_v14  ;;  %v696_v55 = vmax.f32 %v689_v29, %v632_v27 }
 0x15f   :  { %720 = vst [vmem:[%s1605_s2 + $0x10] sm:$0xff] %v713_v39  ;;  %v703_v2 = vadd.f32 %v696_v55, %v668_v9 }
 0x161   :  { %v714_v58 = vadd.f32 %v793_v43, %v703_v2 }
 0x163   :  { %721 = vst [vmem:[%s1605_s2 + $0x18] sm:$0xff] %v714_v58 }

</bundles_post_ra>
